<compile_context>
chip_gen: v5e
topology: v5e:2x2
jax: 0.10.0
libtpu: 0.0.40
codegen_flags: <defaults>
</compile_context>

<pallas_src>
import functools

import jax
import jax.numpy as jnp
from jax.experimental import pallas as pl
from jax.experimental.pallas import tpu as pltpu


def _ce_loss_kernel(logits_ref, label_ref, out_ref, acc_ref, *, tile_n, n_rows):
    i = pl.program_id(0)

    @pl.when(i == 0)
    def _init():
        acc_ref[0, 0] = jnp.float32(0.0)

    logits = logits_ref[...].astype(jnp.float32)   # [tile_n, C]
    label = label_ref[...].astype(jnp.float32)     # [tile_n, C]

    # Valid-row mask for the (possibly partial) last tile.
    row_ids = i * tile_n + jax.lax.broadcasted_iota(jnp.int32, (tile_n, 1), 0)
    valid = row_ids < n_rows                       # [tile_n, 1] bool

    # label / sum(label, dim=1, keepdim=True) + 1e-10   (divide -> recip*mul)
    label_sum = jnp.sum(label, axis=1, keepdims=True)          # [tile_n, 1]
    label = label * pl.reciprocal(label_sum) + 1e-10

    # Numerically-stable log_softmax along the class (last) axis.
    m = jnp.max(logits, axis=1, keepdims=True)                 # [tile_n, 1]
    shifted = logits - m
    lse = jnp.log(jnp.sum(jnp.exp(shifted), axis=1, keepdims=True))
    log_sm = shifted - lse

    # Per-row cross entropy; zero padded rows, accumulate this tile's sum.
    per_row = jnp.sum(label * log_sm, axis=1, keepdims=True)   # [tile_n, 1]
    per_row = jnp.where(valid, per_row, 0.0)
    acc_ref[0, 0] += jnp.sum(per_row)

    @pl.when(i == pl.num_programs(0) - 1)
    def _finalize():
        out_ref[0, 0] = -acc_ref[0, 0] / jnp.float32(n_rows)


def _pick_tile_n(n_rows, n_cols, itemsize):
    """Row-tile size: biggest multiple of the sublane packing that keeps
    2 inputs x 2 pipeline buffers within the default scoped-VMEM budget."""
    row_mult = 16 if itemsize < 4 else 8           # bf16 packs 16 sublanes
    if n_rows <= row_mult:
        return n_rows                              # single block == full batch dim
    budget = 12 << 20                              # safe under v5e's 16 MiB default
    per_row_bytes = 4 * n_cols * itemsize          # 2 inputs x 2 buffers
    tile = max(row_mult, min(512, budget // per_row_bytes, n_rows))
    return (tile // row_mult) * row_mult


def cross_entropy_loss(logits, label, *, tile_n=None):
    """Pallas-backed CrossEntropyLoss.forward.  logits, label: [N, C]."""
    assert logits.shape == label.shape and logits.ndim == 2
    n_rows, n_cols = logits.shape
    if tile_n is None:
        tile_n = _pick_tile_n(n_rows, n_cols, jnp.dtype(logits.dtype).itemsize)
    grid = (pl.cdiv(n_rows, tile_n),)

    kernel = functools.partial(_ce_loss_kernel, tile_n=tile_n, n_rows=n_rows)

    cost = pl.CostEstimate(
        flops=10 * n_rows * n_cols,
        transcendentals=n_rows * n_cols + 2 * n_rows,
        bytes_accessed=logits.size * logits.dtype.itemsize
        + label.size * label.dtype.itemsize + 4,
    )

    out = pl.pallas_call(
        kernel,
        out_shape=jax.ShapeDtypeStruct((1, 1), jnp.float32),
        grid=grid,
        in_specs=[
            pl.BlockSpec((tile_n, n_cols), lambda i: (i, 0)),
            pl.BlockSpec((tile_n, n_cols), lambda i: (i, 0)),
        ],
        out_specs=pl.BlockSpec(memory_space=pltpu.MemorySpace.SMEM),
        scratch_shapes=[pltpu.SMEM((1, 1), jnp.float32)],
        compiler_params=pltpu.CompilerParams(
            dimension_semantics=("arbitrary",)),
        cost_estimate=cost,
    )(logits, label)
    return out[0, 0]


if __name__ == "__main__":
    key = jax.random.PRNGKey(0)
    k1, k2 = jax.random.split(key)

    # Small shapes consistent with the module: 20 samples, 16 classes.
    N, C = 20, 16
    logits = jax.random.normal(k1, (N, C), dtype=jnp.float32)
    # Non-negative soft/one-hot-ish targets (BCE-style use implies this).
    label = jax.random.uniform(k2, (N, C), dtype=jnp.float32,
                               minval=0.0, maxval=1.0)

    # Plain-JAX reference.
    lab = label / jnp.sum(label, axis=1, keepdims=True) + 1e-10
    ref = -jnp.mean(jnp.sum(lab * jax.nn.log_softmax(logits, axis=1), axis=1))

    # Explicit small tile -> 3 grid steps, masked partial last tile (4 rows).
    loss_tiled = cross_entropy_loss(logits, label, tile_n=8)
    jax.block_until_ready(loss_tiled)
    assert jnp.allclose(loss_tiled, ref, rtol=1e-5, atol=1e-5), (loss_tiled, ref)

    # Auto-sized tile path (VMEM-budgeted TILE_N).
    loss_auto = cross_entropy_loss(logits, label)
    jax.block_until_ready(loss_auto)
    assert jnp.allclose(loss_auto, ref, rtol=1e-5, atol=1e-5), (loss_auto, ref)

    print("KERNEL_OK")
</pallas_src>

<mosaic_0001>
module attributes {stable_mosaic.version = 11 : i64} {
  func.func @_ce_loss_kernel(%arg0: i32, %arg1: memref<8x16xf32, #tpu.memory_space<vmem>>, %arg2: memref<8x16xf32, #tpu.memory_space<vmem>>, %arg3: memref<1x1xf32, #tpu.memory_space<smem>>, %arg4: memref<1x1xf32, #tpu.memory_space<smem>>) attributes {dimension_semantics = [#tpu.dimension_semantics<arbitrary>], iteration_bounds = array<i64: 3>, scalar_prefetch = 0 : i64, scratch_operands = 1 : i64, tpu.core_type = #tpu.core_type<tc>, window_params = [{transform_indices = @transform_0, window_bounds = array<i64: 8, 16>}, {transform_indices = @transform_1, window_bounds = array<i64: 8, 16>}, {transform_indices = @transform_2, window_bounds = array<i64: 1, 1>}]} {
    %c0_i32 = arith.constant 0 : i32
    %0 = arith.cmpi eq, %arg0, %c0_i32 : i32
    %1 = arith.extui %0 : i1 to i32
    %c0_i32_0 = arith.constant 0 : i32
    %2 = arith.cmpi ne, %1, %c0_i32_0 : i32
    scf.if %2 {
      %cst_15 = arith.constant 0.000000e+00 : f32
      %c0_16 = arith.constant 0 : index
      %c0_17 = arith.constant 0 : index
      %43 = memref.load %arg4[%c0_16, %c0_17] : memref<1x1xf32, #tpu.memory_space<smem>>
      memref.store %cst_15, %arg4[%c0_16, %c0_17] : memref<1x1xf32, #tpu.memory_space<smem>>
    } else {
    }
    %c0 = arith.constant 0 : index
    %c0_1 = arith.constant 0 : index
    %3 = vector.load %arg1[%c0, %c0_1] : memref<8x16xf32, #tpu.memory_space<vmem>>, vector<8x16xf32>
    %c0_2 = arith.constant 0 : index
    %c0_3 = arith.constant 0 : index
    %4 = vector.load %arg2[%c0_2, %c0_3] : memref<8x16xf32, #tpu.memory_space<vmem>>, vector<8x16xf32>
    %c8_i32 = arith.constant 8 : i32
    %5 = arith.muli %arg0, %c8_i32 : i32
    %6 = tpu.iota {dimensions = array<i32: 0>} : vector<8x1xi32>
    %7 = vector.broadcast %5 : i32 to vector<8x1xi32>
    %8 = arith.addi %7, %6 : vector<8x1xi32>
    %c20_i32 = arith.constant 20 : i32
    %9 = vector.broadcast %c20_i32 : i32 to vector<8x1xi32>
    %10 = arith.cmpi slt, %8, %9 : vector<8x1xi32>
    %cst = arith.constant dense<0.000000e+00> : vector<8xf32>
    %11 = vector.multi_reduction <add>, %4, %cst [1] : vector<8x16xf32> to vector<8xf32>
    %12 = vector.shape_cast %11 : vector<8xf32> to vector<8x1xf32>
    %13 = tpu.reciprocal %12 : vector<8x1xf32> -> vector<8x1xf32>
    %14 = vector.broadcast %13 : vector<8x1xf32> to vector<8x16xf32>
    %15 = arith.mulf %4, %14 : vector<8x16xf32>
    %cst_4 = arith.constant 1.000000e-10 : f32
    %16 = vector.broadcast %cst_4 : f32 to vector<8x16xf32>
    %17 = arith.addf %15, %16 : vector<8x16xf32>
    %cst_5 = arith.constant dense<0xFF800000> : vector<8xf32>
    %18 = vector.multi_reduction <maximumf>, %3, %cst_5 [1] : vector<8x16xf32> to vector<8xf32>
    %19 = vector.shape_cast %18 : vector<8xf32> to vector<8x1xf32>
    %20 = vector.broadcast %19 : vector<8x1xf32> to vector<8x16xf32>
    %21 = arith.subf %3, %20 : vector<8x16xf32>
    %22 = math.exp %21 : vector<8x16xf32>
    %cst_6 = arith.constant dense<0.000000e+00> : vector<8xf32>
    %23 = vector.multi_reduction <add>, %22, %cst_6 [1] : vector<8x16xf32> to vector<8xf32>
    %24 = vector.shape_cast %23 : vector<8xf32> to vector<8x1xf32>
    %25 = math.log %24 : vector<8x1xf32>
    %26 = vector.broadcast %25 : vector<8x1xf32> to vector<8x16xf32>
    %27 = arith.subf %21, %26 : vector<8x16xf32>
    %28 = arith.mulf %17, %27 : vector<8x16xf32>
    %cst_7 = arith.constant dense<0.000000e+00> : vector<8xf32>
    %29 = vector.multi_reduction <add>, %28, %cst_7 [1] : vector<8x16xf32> to vector<8xf32>
    %30 = vector.shape_cast %29 : vector<8xf32> to vector<8x1xf32>
    %cst_8 = arith.constant 0.000000e+00 : f32
    %31 = vector.broadcast %cst_8 : f32 to vector<8x1xf32>
    %32 = arith.select %10, %30, %31 : vector<8x1xi1>, vector<8x1xf32>
    %c0_9 = arith.constant 0 : index
    %c0_10 = arith.constant 0 : index
    %33 = memref.load %arg4[%c0_9, %c0_10] : memref<1x1xf32, #tpu.memory_space<smem>>
    %34 = vector.shape_cast %32 : vector<8x1xf32> to vector<1x8x1xf32>
    %cst_11 = arith.constant dense<0.000000e+00> : vector<1xf32>
    %35 = vector.multi_reduction <add>, %34, %cst_11 [1, 2] : vector<1x8x1xf32> to vector<1xf32>
    %36 = vector.shape_cast %35 : vector<1xf32> to vector<1x1x1xf32>
    %37 = vector.extract %36[0, 0, 0] : f32 from vector<1x1x1xf32>
    %38 = arith.addf %33, %37 : f32
    %c0_12 = arith.constant 0 : index
    %c0_13 = arith.constant 0 : index
    %39 = memref.load %arg4[%c0_12, %c0_13] : memref<1x1xf32, #tpu.memory_space<smem>>
    memref.store %38, %arg4[%c0_12, %c0_13] : memref<1x1xf32, #tpu.memory_space<smem>>
    %c2_i32 = arith.constant 2 : i32
    %40 = arith.cmpi eq, %arg0, %c2_i32 : i32
    %41 = arith.extui %40 : i1 to i32
    %c0_i32_14 = arith.constant 0 : i32
    %42 = arith.cmpi ne, %41, %c0_i32_14 : i32
    scf.if %42 {
      %c0_15 = arith.constant 0 : index
      %c0_16 = arith.constant 0 : index
      %43 = memref.load %arg4[%c0_15, %c0_16] : memref<1x1xf32, #tpu.memory_space<smem>>
      %cst_17 = arith.constant 0.000000e+00 : f32
      %44 = arith.subf %cst_17, %43 : f32
      %cst_18 = arith.constant 2.000000e+01 : f32
      %45 = arith.divf %44, %cst_18 : f32
      %c0_19 = arith.constant 0 : index
      %c0_20 = arith.constant 0 : index
      %46 = memref.load %arg3[%c0_19, %c0_20] : memref<1x1xf32, #tpu.memory_space<smem>>
      memref.store %45, %arg3[%c0_19, %c0_20] : memref<1x1xf32, #tpu.memory_space<smem>>
    } else {
    }
    return
  }
  func.func @transform_0(%arg0: i32) -> (i32, i32) {
    %c0_i32 = arith.constant 0 : i32
    %c0_i32_0 = arith.constant 0 : i32
    return %arg0, %c0_i32 : i32, i32
  }
  func.func @transform_1(%arg0: i32) -> (i32, i32) {
    %c0_i32 = arith.constant 0 : i32
    %c0_i32_0 = arith.constant 0 : i32
    return %arg0, %c0_i32 : i32, i32
  }
  func.func @transform_2(%arg0: i32) -> (i32, i32) {
    %c0_i32 = arith.constant 0 : i32
    %c0_i32_0 = arith.constant 0 : i32
    %c0_i32_1 = arith.constant 0 : i32
    return %c0_i32, %c0_i32_0 : i32, i32
  }
}

</mosaic_0001>

<bundles_post_ra>
// kernel: tpu_custom_call.1
= control target key start
LH: loop header
LB: loop body
LE: loop exit
PB: predicated region body
PF: predicated region fallthrough
CT: control target
= control target key end

     0   :  { %7 = vsyncpa [#allocation4], 0  ;;  %s375_s9 = smov 0   ;;  %s407_s0 = inlined_call_operand.vmem [shape: f32[20,16], index: 0, kind: input, shape index: {}]   ;;  %s408_s1 = inlined_call_operand.vmem [shape: f32[20,16], index: 1, kind: input, shape index: {}]   ;;  %s409_s2 = inlined_call_operand.hbm [shape: f32[1,1], index: 2, kind: output, shape index: {}]  }
   0x1 LB: > { %s381_s10 = sadd.s32 4294967295, %s355_s9   ;;  %p289_p0 = scmp.ge.s32.totalorder %s355_s9, 1  ;;  %s355_s9 = sphi %s375_s9, %s13_s9  }
   0x2   : > { %p116_p1 = scmp.lt.s32.totalorder %s355_s9, 4 }
   0x4   : > { %p117_p2 = pnand %p289_p0, %p116_p1 }
   0x5   : > { %p136_p3 = scmp.lt.s32.totalorder (!%p117_p2), %s381_s10, 2  ;;  %s293_s19 = sshll.u32 (!%p117_p2), %s381_s10, 3 }
   0x6   : > { %120 = sbr.rel (%p117_p2) target bundleno = 650 (0x28a), region = 28  ;;  %p309_p4 = scmp.eq.s32.totalorder (!%p117_p2), %s381_s10, 0 }
   0x7   : > { %s357_s20 = smov (!%p117_p2), 0.0   ;;  %p294_p5 = scmp.ne.s32.totalorder (!%p117_p2), %s381_s10, 2 }
   0xb   : > { %s137_s11 = scalar_select %p136_p3, %s381_s10, 2  ;;  %vm158_vm0 = vcmask 130048   ;;  %v153_v28 = vlaneseq  ;;  %v155_v30 = vstv %s293_s19  ;;  %vm196_vm6 = vcmask 7168  }
   0xc   : > { %304 = sst [smem:[#allocation2]] (%p309_p4), %s357_s20 }
   0xd   : > { %s290_s12 = sshll.u32 %s137_s11, 3  ;;  %v154_v29 = vshrl.u32 %v153_v28, 7  ;;  %s195_s21 = sld [smem:[#allocation2]] }
   0xe   : > { %s139_s15 = scalar_lea.vmem %s407_s0, %s290_s12  ;;  %s143_s18 = scalar_lea.vmem %s408_s1, %s290_s12 }
   0xf   : > { %v150_v0 = vld [vmem:[%s139_s15] sm:$0xff]  ;;  %v156_v31 = vadd.s32 %v155_v30, %v154_v29 }
  0x10   : > { %v178_v1 = vsel %vm158_vm0, %v150_v0, -inf  ;;  %v151_v2 = vld [vmem:[%s143_s18] sm:$0xff] }
  0x11   : > { %179 = vmax.xlane.f32.xlu0 %v178_v1  ;;  %v159_v3 = vsel %vm158_vm0, %v151_v2, 0.0  ;;  %vm157_vm5 = vcmp.lt.s32.totalorder %v156_v31, 20 }
  0x19   : > { %160 = vadd.xlane.f32.xlu0 %v159_v3 }
  0x84   : > { %v180_v4 = vpop.xlane.xlu0 %179 }
  0x85   : > { %v181_v5 = vsub.f32 %v150_v0, %v180_v4 }
  0x87   : > { %v182_v6 = vmul.f32 1.442695, %v181_v5 }
  0x89   : > { %323 = vpow2.f32 %v182_v6 }
  0x8c   : > { %v161_v9 = vpop.xlane.xlu0 %160 }
  0x8d   : > { %325 = vrcp.f32 %v161_v9  ;;  %vm167_vm1 = vweird.f32 %v161_v9  ;;  %v173_v14 = vand.u32 2147483648, %v161_v9  ;;  %v171_v16 = vand.u32 2147483647, %v161_v9 }
  0x8f   : > { %v324_v7 = vpop.eup %323  ;;  %v174_v17 = vor.u32 1.1754944e-38, %v173_v14  ;;  %vm172_vm4 = vcmp.eq.f32.partialorder %v171_v16, 8.507059e+37 }
  0x90   : > { %v184_v8 = vsel %vm158_vm0, %v324_v7, 0.0 }
  0x91   : > { %185 = vadd.xlane.f32.xlu1 %v184_v8 }
  0x93   : > { %v326_v10 = vpop.eup %325 }
  0x94   : > { %v163_v11 = vmul.f32 %v326_v10, %v161_v9  ;;  %vm168_vm2 = vweird.f32 %v326_v10 }
  0x95   : > { %vm169_vm3 = vmor %vm167_vm1, %vm168_vm2 }
  0x96   : > { %v164_v12 = vsub.f32 1.0, %v163_v11 }
  0x98   : > { %v165_v13 = vmul.f32 %v326_v10, %v164_v12 }
  0x9a   : > { %v166_v15 = vadd.f32 %v326_v10, %v165_v13 }
  0x9c   : > { %v170_v19 = vsel %vm169_vm3, %v326_v10, %v166_v15 }
  0x9d   : > { %v175_v20 = vsel %vm172_vm4, %v174_v17, %v170_v19 }
  0x9e   : > { %v176_v21 = vmul.f32 %v175_v20, %v151_v2 }
  0xa0   : > { %v177_v25 = vadd.f32 1e-10, %v176_v21 }
 0x104   : > { %v186_v18 = vpop.xlane.xlu1 %185 }
 0x105   : > { %327 = vlog2.f32 %v186_v18 }
 0x10b   : > { %v328_v22 = vpop.eup %327 }
 0x10c   : > { %v188_v23 = vmul.f32 0.6931472, %v328_v22 }
 0x10e   : > { %v189_v24 = vsub.f32 %v181_v5, %v188_v23 }
 0x110   : > { %v190_v26 = vmul.f32 %v189_v24, %v177_v25 }
 0x112   : > { %v191_v27 = vsel %vm158_vm0, %v190_v26, 0.0 }
 0x113   : > { %192 = vadd.xlane.f32.xlu1 %v191_v27 }
 0x186   : > { %v193_v32 = vpop.xlane.xlu1 %192 }
 0x187   : > { %v194_v33 = vsel %vm157_vm5, %v193_v32, 0.0 }
 0x188   : > { %v197_v34 = vsel %vm196_vm6, %v194_v33, 0.0 }
 0x189   : > { %198 = vadd.xlane.f32.xlu2 %v197_v34 }
 0x1fc   : > { %v199_v35 = vpop.xlane.xlu2 %198 }
 0x1fd   : > { %v200_v36 = vrot.slane %v199_v35, 4 }
 0x1ff   : > { %v201_v37 = vadd.f32 %v200_v36, %v199_v35 }
 0x201   : > { %v202_v38 = vrot.slane %v201_v37, 2 }
 0x203   : > { %v203_v39 = vadd.f32 %v202_v38, %v201_v37 }
 0x205   : > { %v204_v40 = vrot.slane %v203_v39, 1 }
 0x207   : > { %v205_v41 = vadd.f32 %v204_v40, %v203_v39 }
 0x209   : > { %299 = vpush %v205_v41 }
 0x239   : > { %213 = sbr.rel (%p294_p5) target bundleno = 644 (0x284), region = 36 }
 0x23a   : > { %s300_s22 = spop %299 }
 0x23b   : > { %s207_s23 = sadd.f32 %s300_s22, %s195_s21 }
 0x23d   : > { %209 = sst [smem:[#allocation2]] %s207_s23 }
 0x23e   : > { %v358_v42 = vmov 20.0   ;;  %s214_s24 = sld [smem:[#allocation2]] }
 0x23f   : > { %329 = vrcp.f32 %v358_v42 }
 0x244   : > { %s215_s25 = ssub.f32 0.0, %s214_s24 }
 0x245   : > { %v330_v43 = vpop.eup %329 }
 0x246   : > { %v217_v44 = vmul.f32 20.0, %v330_v43  ;;  %vm221_vm7 = vweird.f32 %v330_v43 }
 0x248   : > { %v218_v45 = vsub.f32 1.0, %v217_v44 }
 0x24a   : > { %v219_v46 = vmul.f32 %v330_v43, %v218_v45 }
 0x24c   : > { %v220_v47 = vadd.f32 %v330_v43, %v219_v46 }
 0x24e   : > { %v222_v48 = vsel %vm221_vm7, %v330_v43, %v220_v47 }
 0x24f   : > { %301 = vpush %v222_v48 }
 0x280   : > { %s302_s26 = spop %301 }
 0x281   : > { %s224_s27 = smul.f32 %s302_s26, %s215_s25 }
 0x283   : > { %226 = sst [smem:[#allocation3]] %s224_s27 }
 0x284 PF: > { %p310_p6 = scmp.eq.s32.totalorder %s381_s10, 2  ;;  %s233_s30 = sshll.u32 %s409_s2, 4  ;;  %s234_s30 = int_to_ptr.hbm [resolvable:$true] %s233_s30 }
 0x285   : > { %s359_s3 = smov [#allocation3]  }
 0x286   : > { %306 = dma.smem_to_hbm (%p310_p6), %s359_s3, 16, %s234_s30, [#allocation4]  }
 0x287   : > { %350 = dma.done.wait (%p310_p6), [#allocation4], 16  }
 0x288   : > { %352 = vsyncadd (%p310_p6), [#allocation4], 4294967280 }
 0x289   : > { %242 = sfence }
 0x28a PF: > { %s13_s9 = sadd.s32 1, %s355_s9  }
 0x28b   : > { %p10_p7 = scmp.ge.s32.totalorder %s13_s9, 5  }
 0x28d   :  { %12 = sbr.rel (!%p10_p7) target bundleno = 1 (0x1), region = 69 }
 0x292   :  { %248 = vsyncpa [#allocation4], 1 }
 0x293   :  { %250 = vsyncpa [#allocation4 + $0x1], 1 }

</bundles_post_ra>
